<compile_context>
chip_gen: v7x
topology: tpu7x:2x2x1
jax: 0.10.0
libtpu: 0.0.40
codegen_flags: <defaults>
</compile_context>

<pallas_src>
import jax
import jax.numpy as jnp
from jax.experimental import pallas as pl
from jax.experimental.pallas import tpu as pltpu


def _round_up(x, m):
    return (x + m - 1) // m * m


# ----------------------------------------------------------------------------
# Pallas kernel: K matmuls on leading-dim slabs + running max + bias + ReLU
# ----------------------------------------------------------------------------
def _mlp_maxpool_kernel(x_ref, w_ref, b_ref, o_ref):
    # x_ref: (K, Cin, tm) bf16  -- neighbor-major grouped features
    # w_ref: (Cout, Cin)  bf16  -- transposed 1x1-conv weights
    # b_ref: (Cout, 1)    f32   -- bias (lane-broadcast)
    # o_ref: (Cout, tm)   f32   -- lane-dense pooled output block
    k_total = x_ref.shape[0]          # static; nsample is small -> unrolled
    # Each x_ref[k] is a contiguous (Cin, tm) slab (free leading-dim slice);
    # the neighbor reduction is a running elementwise max on the VPU.
    acc = jnp.dot(w_ref[...], x_ref[0], preferred_element_type=jnp.float32)
    for k in range(1, k_total):
        acc = jnp.maximum(
            acc, jnp.dot(w_ref[...], x_ref[k], preferred_element_type=jnp.float32))
    # Bias + ReLU once after pooling: relu(max_k(Wx_k) + b) == max_k relu(Wx_k + b).
    o_ref[...] = jnp.maximum(acc + b_ref[...], 0.0)


# ----------------------------------------------------------------------------
# VMEM budget / tile sizing
# ----------------------------------------------------------------------------
def _vmem_limit_bytes():
    # ~3/4 of physical VMEM, capped at 96 MiB: ~96 MiB on 128-MiB parts
    # (v5e/v6e), ~48 MiB on 64-MiB v7x.
    try:
        cap = int(pltpu.get_tpu_info().vmem_capacity_bytes)
    except Exception:  # not on TPU / API drift -> conservative (v7x-sized)
        cap = 64 * 1024 * 1024
    return int(min(cap * 3 // 4, 96 * 1024 * 1024))


def _pick_tile_cols(mtot, k, c, cout, vmem_limit):
    """Centers (output lane columns) per grid step.

    Budgets with VMEM-*padded* block sizes (bf16 sublanes pad to 16, f32 to 8;
    the lane axis is tm itself so it stays unpadded when tm % 128 == 0) and
    the default 2-deep pipelining of both the input and the output block.
    """
    per_col = 2 * k * _round_up(c, 16) * 2 + 2 * _round_up(cout, 8) * 4
    budget = vmem_limit // 3        # headroom for weights/bias/compiler scratch
    tm = max(128, budget // per_col // 128 * 128)
    tm = min(tm, 4096)              # HBM-roofline plateau; larger only adds latency
    mp = _round_up(mtot, 128)
    tm = min(tm, mp)
    # Dual-TC (v7x) sharding of the "parallel" axis: only split into >=2 steps
    # when each half still gets a large (>=512-lane) tile; on single-TC
    # v5e/v6e a starved split is pure per-step overhead.
    if tm >= mp and mp >= 2 * 512:
        tm = max(512, _round_up(mp // 2, 128))
    return tm


# ----------------------------------------------------------------------------
# One PAConv-substitute layer: shared 1x1 conv + ReLU + max-pool over nsample
# ----------------------------------------------------------------------------
def paconv_layer_maxpool(feat, group_idx, w, bvec):
    """
    feat:      (B, C, N)  f32 per-point features (channel-first)
    group_idx: (B, M, K)  int32 neighbor indices into N
    w:         (C, Cout)  f32,  bvec: (Cout,) f32
    returns:   (B, Cout, M) f32
    """
    B, C, N = feat.shape
    _, M, K = group_idx.shape
    Cout = w.shape[1]
    Mtot = B * M

    vmem_limit = _vmem_limit_bytes()
    tm = _pick_tile_cols(Mtot, K, C, Cout, vmem_limit)
    Mp = pl.cdiv(Mtot, tm) * tm

    # Cast to bf16 BEFORE the gather (half-width HBM write of the big tensor)
    # and pad the INDICES rather than the gathered data, so the gather emits
    # the kernel-ready padded (K, C, Mp) layout in a single pass.
    feat_bf = feat.astype(jnp.bfloat16)
    rows = jnp.arange(Mp, dtype=jnp.int32)
    b_idx = jnp.minimum(rows // M, B - 1)
    m_idx = rows % M
    idx_flat = group_idx[b_idx, m_idx]                          # (Mp, K)
    # grouped[k, c, r] = feat_bf[b_idx[r], c, idx_flat[r, k]]
    grouped = feat_bf[b_idx[None, None, :],
                      jnp.arange(C, dtype=jnp.int32)[None, :, None],
                      idx_flat.T[:, None, :]]                   # (K, C, Mp) bf16

    wt = jnp.transpose(w).astype(jnp.bfloat16)                  # (Cout, C)
    b2 = bvec.reshape(Cout, 1).astype(jnp.float32)

    out = pl.pallas_call(
        _mlp_maxpool_kernel,
        out_shape=jax.ShapeDtypeStruct((Cout, Mp), jnp.float32),
        grid_spec=pltpu.PrefetchScalarGridSpec(
            num_scalar_prefetch=0,
            grid=(Mp // tm,),
            in_specs=[
                pl.BlockSpec((K, C, tm), lambda i: (0, 0, i)),
                pl.BlockSpec((Cout, C), lambda i: (0, 0)),
                pl.BlockSpec((Cout, 1), lambda i: (0, 0)),
            ],
            out_specs=pl.BlockSpec((Cout, tm), lambda i: (0, i)),
        ),
        compiler_params=pltpu.CompilerParams(
            dimension_semantics=("parallel",),
            vmem_limit_bytes=vmem_limit,
        ),
    )(grouped, wt, b2)

    out = out[:, :Mtot]                                         # (Cout, B*M)
    return jnp.transpose(out.reshape(Cout, B, M), (1, 0, 2))    # (B, Cout, M)


# ----------------------------------------------------------------------------
# Plain-JAX glue: FPS, sort-free ball query (data-dependent indexing)
# ----------------------------------------------------------------------------
def farthest_point_sample(xyz, npoint):
    # xyz: (B, N, 3) -> idx (B, npoint) int32   (pointops.furthestsampling)
    B, N, _ = xyz.shape

    def body(i, state):
        idxs, dists, farthest = state
        idxs = idxs.at[:, i].set(farthest)
        centroid = jnp.take_along_axis(xyz, farthest[:, None, None], axis=1)
        d = jnp.sum((xyz - centroid) ** 2, axis=-1)
        dists = jnp.minimum(dists, d)
        farthest = jnp.argmax(dists, axis=-1).astype(jnp.int32)
        return idxs, dists, farthest

    idxs0 = jnp.zeros((B, npoint), dtype=jnp.int32)
    dists0 = jnp.full((B, N), 1e10, dtype=xyz.dtype)
    far0 = jnp.zeros((B,), dtype=jnp.int32)
    idxs, _, _ = jax.lax.fori_loop(0, npoint, body, (idxs0, dists0, far0))
    return idxs


def ball_query(xyz, new_xyz, radius, nsample):
    """pointops.ballquery: first `nsample` in-radius indices (index order),
    padded with the first found index (0 if the ball is empty).

    Sort-free: mask -> prefix-sum rank -> scatter-min into output slots.
    TODO(synk): tile the (B, M, N) distance matrix over N-chunks for large N.
    """
    B, N, _ = xyz.shape
    M = new_xyz.shape[1]
    d2 = jnp.sum((new_xyz[:, :, None, :] - xyz[:, None, :, :]) ** 2, axis=-1)
    mask = d2 <= radius * radius                                    # (B, M, N)
    rank = jnp.cumsum(mask.astype(jnp.int32), axis=-1) - 1          # (B, M, N)
    slot = jnp.where(mask & (rank < nsample), rank, nsample)        # dump slot
    src = jnp.broadcast_to(jnp.arange(N, dtype=jnp.int32), (B, M, N))
    out = jnp.full((B, M, nsample + 1), N, dtype=jnp.int32)
    bidx = jnp.arange(B, dtype=jnp.int32)[:, None, None]
    midx = jnp.arange(M, dtype=jnp.int32)[None, :, None]
    out = out.at[bidx, midx, slot].min(src)
    out = out[:, :, :nsample]
    first = out[:, :, :1]
    first = jnp.where(first >= N, 0, first)      # empty ball -> index 0
    return jnp.where(out >= N, first, out)


# ----------------------------------------------------------------------------
# Full set-abstraction forward
# ----------------------------------------------------------------------------
def pointnet2_sa_forward(xyz, features, params, npoint, radius, nsample):
    """
    xyz:      (B, N0, 3)
    features: (B, Cin, N0)
    params:   list of (W (cin, cout), b (cout,)) for each mlp layer
    returns:  new_xyz (B, npoint, 3), new_features (B, Cout_last, npoint)
    """
    fps_idx = farthest_point_sample(xyz, npoint)                       # (B, npoint)
    new_xyz = jnp.take_along_axis(xyz, fps_idx[:, :, None], axis=1)    # (B, npoint, 3)

    cur_xyz = xyz
    feat = features                                                    # (B, C, N)
    # Per-layer re-group + per-layer max-pool, exactly as the CUDA module's
    # inner `for j in range(len(self.mlps[i]))` loop does.
    for j, (W, bvec) in enumerate(params):
        group_idx = ball_query(cur_xyz, new_xyz, radius, nsample)      # (B, M, K)
        if j == 0:
            # use_xyz: concat ABSOLUTE per-point xyz channels before layer 0,
            # as in `torch.cat((xyz.permute(0, 2, 1), new_features), dim=1)`.
            feat = jnp.concatenate(
                [jnp.transpose(cur_xyz, (0, 2, 1)), feat], axis=1)     # (B, 3+C, N)
        feat = paconv_layer_maxpool(feat, group_idx, W, bvec)          # (B, Cout, M)
        cur_xyz = new_xyz                                              # xyz = new_xyz

    return new_xyz, feat


# ----------------------------------------------------------------------------
# Demo
# ----------------------------------------------------------------------------
if __name__ == "__main__":
    key = jax.random.PRNGKey(0)
    B, N0, Cin = 2, 64, 4
    npoint, radius, nsample = 16, 0.5, 8
    mlp = [Cin, 8, 16]                       # module arg `mlp`
    mlp_spec = [mlp[0] + 3] + mlp[1:]        # use_xyz -> mlp_spec[0] += 3

    kx, kf, kp = jax.random.split(key, 3)
    xyz = jax.random.uniform(kx, (B, N0, 3), dtype=jnp.float32)
    features = jax.random.normal(kf, (B, Cin, N0), dtype=jnp.float32)

    # Deterministic synthetic parameters (no checkpoint load)
    params = []
    pk = kp
    for cin, cout in zip(mlp_spec[:-1], mlp_spec[1:]):
        pk, wk = jax.random.split(pk)
        W = jax.random.normal(wk, (cin, cout), dtype=jnp.float32) / jnp.sqrt(float(cin))
        bvec = jnp.zeros((cout,), dtype=jnp.float32)
        params.append((W, bvec))

    new_xyz, new_feats = pointnet2_sa_forward(
        xyz, features, params, npoint, radius, nsample)
    jax.block_until_ready((new_xyz, new_feats))
    assert new_xyz.shape == (B, npoint, 3)
    assert new_feats.shape == (B, mlp_spec[-1], npoint)
    assert bool(jnp.all(jnp.isfinite(new_feats)))
    print("KERNEL_OK")
</pallas_src>

<mosaic_0001>
module attributes {stable_mosaic.version = 11 : i64} {
  func.func @_mlp_maxpool_kernel(%arg0: i32, %arg1: memref<8x7x128xbf16, #tpu.memory_space<vmem>>, %arg2: memref<8x7xbf16, #tpu.memory_space<vmem>>, %arg3: memref<8x1xf32, #tpu.memory_space<vmem>>, %arg4: memref<8x128xf32, #tpu.memory_space<vmem>>) attributes {dimension_semantics = [#tpu.dimension_semantics<parallel>], iteration_bounds = array<i64: 1>, scalar_prefetch = 0 : i64, scratch_operands = 0 : i64, tpu.core_type = #tpu.core_type<tc>, window_params = [{transform_indices = @transform_0, window_bounds = array<i64: 8, 7, 128>}, {pipeline_mode = #tpu.pipeline_mode<synchronous>, transform_indices = @transform_1, window_bounds = array<i64: 8, 7>}, {pipeline_mode = #tpu.pipeline_mode<synchronous>, transform_indices = @transform_2, window_bounds = array<i64: 8, 1>}, {transform_indices = @transform_3, window_bounds = array<i64: 8, 128>}]} {
    %c0 = arith.constant 0 : index
    %c0_0 = arith.constant 0 : index
    %0 = vector.load %arg2[%c0, %c0_0] : memref<8x7xbf16, #tpu.memory_space<vmem>>, vector<8x7xbf16>
    %c0_1 = arith.constant 0 : index
    %c0_2 = arith.constant 0 : index
    %c0_3 = arith.constant 0 : index
    %1 = vector.load %arg1[%c0_1, %c0_2, %c0_3] : memref<8x7x128xbf16, #tpu.memory_space<vmem>>, vector<1x7x128xbf16>
    %2 = vector.shape_cast %1 : vector<1x7x128xbf16> to vector<7x128xbf16>
    %cst = arith.constant dense<0.000000e+00> : vector<8x128xf32>
    %3 = tpu.matmul %0, %2, %cst {dimension_numbers = #tpu.dot_dimension_numbers<[1], [0], [0], [1], [0, 0, 1, 1], [], []>} : vector<8x7xbf16>, vector<7x128xbf16>, vector<8x128xf32> -> vector<8x128xf32>
    %c0_4 = arith.constant 0 : index
    %c0_5 = arith.constant 0 : index
    %4 = vector.load %arg2[%c0_4, %c0_5] : memref<8x7xbf16, #tpu.memory_space<vmem>>, vector<8x7xbf16>
    %c1 = arith.constant 1 : index
    %c0_6 = arith.constant 0 : index
    %c0_7 = arith.constant 0 : index
    %5 = vector.load %arg1[%c1, %c0_6, %c0_7] : memref<8x7x128xbf16, #tpu.memory_space<vmem>>, vector<1x7x128xbf16>
    %6 = vector.shape_cast %5 : vector<1x7x128xbf16> to vector<7x128xbf16>
    %cst_8 = arith.constant dense<0.000000e+00> : vector<8x128xf32>
    %7 = tpu.matmul %4, %6, %cst_8 {dimension_numbers = #tpu.dot_dimension_numbers<[1], [0], [0], [1], [0, 0, 1, 1], [], []>} : vector<8x7xbf16>, vector<7x128xbf16>, vector<8x128xf32> -> vector<8x128xf32>
    %8 = arith.maximumf %3, %7 : vector<8x128xf32>
    %c0_9 = arith.constant 0 : index
    %c0_10 = arith.constant 0 : index
    %9 = vector.load %arg2[%c0_9, %c0_10] : memref<8x7xbf16, #tpu.memory_space<vmem>>, vector<8x7xbf16>
    %c2 = arith.constant 2 : index
    %c0_11 = arith.constant 0 : index
    %c0_12 = arith.constant 0 : index
    %10 = vector.load %arg1[%c2, %c0_11, %c0_12] : memref<8x7x128xbf16, #tpu.memory_space<vmem>>, vector<1x7x128xbf16>
    %11 = vector.shape_cast %10 : vector<1x7x128xbf16> to vector<7x128xbf16>
    %cst_13 = arith.constant dense<0.000000e+00> : vector<8x128xf32>
    %12 = tpu.matmul %9, %11, %cst_13 {dimension_numbers = #tpu.dot_dimension_numbers<[1], [0], [0], [1], [0, 0, 1, 1], [], []>} : vector<8x7xbf16>, vector<7x128xbf16>, vector<8x128xf32> -> vector<8x128xf32>
    %13 = arith.maximumf %8, %12 : vector<8x128xf32>
    %c0_14 = arith.constant 0 : index
    %c0_15 = arith.constant 0 : index
    %14 = vector.load %arg2[%c0_14, %c0_15] : memref<8x7xbf16, #tpu.memory_space<vmem>>, vector<8x7xbf16>
    %c3 = arith.constant 3 : index
    %c0_16 = arith.constant 0 : index
    %c0_17 = arith.constant 0 : index
    %15 = vector.load %arg1[%c3, %c0_16, %c0_17] : memref<8x7x128xbf16, #tpu.memory_space<vmem>>, vector<1x7x128xbf16>
    %16 = vector.shape_cast %15 : vector<1x7x128xbf16> to vector<7x128xbf16>
    %cst_18 = arith.constant dense<0.000000e+00> : vector<8x128xf32>
    %17 = tpu.matmul %14, %16, %cst_18 {dimension_numbers = #tpu.dot_dimension_numbers<[1], [0], [0], [1], [0, 0, 1, 1], [], []>} : vector<8x7xbf16>, vector<7x128xbf16>, vector<8x128xf32> -> vector<8x128xf32>
    %18 = arith.maximumf %13, %17 : vector<8x128xf32>
    %c0_19 = arith.constant 0 : index
    %c0_20 = arith.constant 0 : index
    %19 = vector.load %arg2[%c0_19, %c0_20] : memref<8x7xbf16, #tpu.memory_space<vmem>>, vector<8x7xbf16>
    %c4 = arith.constant 4 : index
    %c0_21 = arith.constant 0 : index
    %c0_22 = arith.constant 0 : index
    %20 = vector.load %arg1[%c4, %c0_21, %c0_22] : memref<8x7x128xbf16, #tpu.memory_space<vmem>>, vector<1x7x128xbf16>
    %21 = vector.shape_cast %20 : vector<1x7x128xbf16> to vector<7x128xbf16>
    %cst_23 = arith.constant dense<0.000000e+00> : vector<8x128xf32>
    %22 = tpu.matmul %19, %21, %cst_23 {dimension_numbers = #tpu.dot_dimension_numbers<[1], [0], [0], [1], [0, 0, 1, 1], [], []>} : vector<8x7xbf16>, vector<7x128xbf16>, vector<8x128xf32> -> vector<8x128xf32>
    %23 = arith.maximumf %18, %22 : vector<8x128xf32>
    %c0_24 = arith.constant 0 : index
    %c0_25 = arith.constant 0 : index
    %24 = vector.load %arg2[%c0_24, %c0_25] : memref<8x7xbf16, #tpu.memory_space<vmem>>, vector<8x7xbf16>
    %c5 = arith.constant 5 : index
    %c0_26 = arith.constant 0 : index
    %c0_27 = arith.constant 0 : index
    %25 = vector.load %arg1[%c5, %c0_26, %c0_27] : memref<8x7x128xbf16, #tpu.memory_space<vmem>>, vector<1x7x128xbf16>
    %26 = vector.shape_cast %25 : vector<1x7x128xbf16> to vector<7x128xbf16>
    %cst_28 = arith.constant dense<0.000000e+00> : vector<8x128xf32>
    %27 = tpu.matmul %24, %26, %cst_28 {dimension_numbers = #tpu.dot_dimension_numbers<[1], [0], [0], [1], [0, 0, 1, 1], [], []>} : vector<8x7xbf16>, vector<7x128xbf16>, vector<8x128xf32> -> vector<8x128xf32>
    %28 = arith.maximumf %23, %27 : vector<8x128xf32>
    %c0_29 = arith.constant 0 : index
    %c0_30 = arith.constant 0 : index
    %29 = vector.load %arg2[%c0_29, %c0_30] : memref<8x7xbf16, #tpu.memory_space<vmem>>, vector<8x7xbf16>
    %c6 = arith.constant 6 : index
    %c0_31 = arith.constant 0 : index
    %c0_32 = arith.constant 0 : index
    %30 = vector.load %arg1[%c6, %c0_31, %c0_32] : memref<8x7x128xbf16, #tpu.memory_space<vmem>>, vector<1x7x128xbf16>
    %31 = vector.shape_cast %30 : vector<1x7x128xbf16> to vector<7x128xbf16>
    %cst_33 = arith.constant dense<0.000000e+00> : vector<8x128xf32>
    %32 = tpu.matmul %29, %31, %cst_33 {dimension_numbers = #tpu.dot_dimension_numbers<[1], [0], [0], [1], [0, 0, 1, 1], [], []>} : vector<8x7xbf16>, vector<7x128xbf16>, vector<8x128xf32> -> vector<8x128xf32>
    %33 = arith.maximumf %28, %32 : vector<8x128xf32>
    %c0_34 = arith.constant 0 : index
    %c0_35 = arith.constant 0 : index
    %34 = vector.load %arg2[%c0_34, %c0_35] : memref<8x7xbf16, #tpu.memory_space<vmem>>, vector<8x7xbf16>
    %c7 = arith.constant 7 : index
    %c0_36 = arith.constant 0 : index
    %c0_37 = arith.constant 0 : index
    %35 = vector.load %arg1[%c7, %c0_36, %c0_37] : memref<8x7x128xbf16, #tpu.memory_space<vmem>>, vector<1x7x128xbf16>
    %36 = vector.shape_cast %35 : vector<1x7x128xbf16> to vector<7x128xbf16>
    %cst_38 = arith.constant dense<0.000000e+00> : vector<8x128xf32>
    %37 = tpu.matmul %34, %36, %cst_38 {dimension_numbers = #tpu.dot_dimension_numbers<[1], [0], [0], [1], [0, 0, 1, 1], [], []>} : vector<8x7xbf16>, vector<7x128xbf16>, vector<8x128xf32> -> vector<8x128xf32>
    %38 = arith.maximumf %33, %37 : vector<8x128xf32>
    %c0_39 = arith.constant 0 : index
    %c0_40 = arith.constant 0 : index
    %39 = vector.load %arg3[%c0_39, %c0_40] : memref<8x1xf32, #tpu.memory_space<vmem>>, vector<8x1xf32>
    %40 = vector.broadcast %39 : vector<8x1xf32> to vector<8x128xf32>
    %41 = arith.addf %38, %40 : vector<8x128xf32>
    %cst_41 = arith.constant 0.000000e+00 : f32
    %42 = vector.broadcast %cst_41 : f32 to vector<8x128xf32>
    %43 = arith.maximumf %41, %42 : vector<8x128xf32>
    %c0_42 = arith.constant 0 : index
    %c0_43 = arith.constant 0 : index
    %44 = vector.load %arg4[%c0_42, %c0_43] : memref<8x128xf32, #tpu.memory_space<vmem>>, vector<8x128xf32>
    tpu.vector_store %arg4[%c0_42, %c0_43], %43 {strides = array<i32>} : memref<8x128xf32, #tpu.memory_space<vmem>>, vector<8x128xf32>,
    return
  }
  func.func @transform_0(%arg0: i32) -> (i32, i32, i32) {
    %c0_i32 = arith.constant 0 : i32
    %c0_i32_0 = arith.constant 0 : i32
    %c0_i32_1 = arith.constant 0 : i32
    return %c0_i32, %c0_i32_0, %arg0 : i32, i32, i32
  }
  func.func @transform_1(%arg0: i32) -> (i32, i32) {
    %c0_i32 = arith.constant 0 : i32
    %c0_i32_0 = arith.constant 0 : i32
    %c0_i32_1 = arith.constant 0 : i32
    return %c0_i32, %c0_i32_0 : i32, i32
  }
  func.func @transform_2(%arg0: i32) -> (i32, i32) {
    %c0_i32 = arith.constant 0 : i32
    %c0_i32_0 = arith.constant 0 : i32
    %c0_i32_1 = arith.constant 0 : i32
    return %c0_i32, %c0_i32_0 : i32, i32
  }
  func.func @transform_3(%arg0: i32) -> (i32, i32) {
    %c0_i32 = arith.constant 0 : i32
    %c0_i32_0 = arith.constant 0 : i32
    return %c0_i32, %arg0 : i32, i32
  }
}

</mosaic_0001>

<bundles_post_ra>
// kernel: tpu_custom_call.1
= control target key start
LH: loop header
LB: loop body
LE: loop exit
PB: predicated region body
PF: predicated region fallthrough
CT: control target
= control target key end

     0   :  { %vm22_vm0 = vcmask 1042432   ;;  %vm23_vm1 = vcmask 1043456   ;;  %v523_v1 = vmov 0.0   ;;  %v524_v2 = vmov 65535   ;;  %s606_s0 = inlined_call_operand.vmem [shape: bf16[8,7,128], index: 0, kind: input, shape index: {}]   ;;  %s607_s1 = inlined_call_operand.vmem [shape: bf16[8,7], index: 1, kind: input, shape index: {}]   ;;  %s608_s2 = inlined_call_operand.vmem [shape: f32[8,1], index: 2, kind: input, shape index: {}]   ;;  %s609_s3 = inlined_call_operand.hbm [shape: f32[8,128], index: 3, kind: output, shape index: {}]  }
   0x1   :  { %v17_v0 = vld [vmem:[%s606_s0] sm:$0xf]  ;;  %445 = vmatprep.subr.bf16.mxu0 %v523_v1  ;;  %451 = vmatprep.subr.bf16.mxu1 %v523_v1  ;;  %v24_v3 = vsel %vm22_vm0, 4294967295, %v524_v2  ;;  %v415_v4 = vld [vmem:[%s606_s0 + $0x4] sm:$0xf]  ;;  %vm525_vm2 = vmmov 0  }
   0x2   :  { %v25_v5 = vsel %vm23_vm1, %v24_v3, 0  ;;  %447 = vmatprep.mubr.msk.bf16.mxu0 %vm525_vm2, %v523_v1  ;;  %453 = vmatprep.mubr.msk.bf16.mxu1 %vm525_vm2, %v523_v1  ;;  %v417_v6 = vld [vmem:[%s606_s0 + $0x8] sm:$0xf]  ;;  %v419_v7 = vld [vmem:[%s606_s0 + $0xc] sm:$0xf] }
   0x3   :  { %v27_v8 = vand.u32 %v25_v5, %v17_v0  ;;  %v72_v9 = vand.u32 %v415_v4, %v25_v5 }
   0x4   :  { %8 = vsyncpa [#allocation3], 0  ;;  %v16_v10 = vld [vmem:[%s607_s1] sm:$0xf]  ;;  %vm18_vm3 = vcmask 56320   ;;  %v118_v11 = vand.u32 %v417_v6, %v25_v5  ;;  %v164_v12 = vand.u32 %v419_v7, %v25_v5  ;;  %v526_v13 = vmov 0  }
   0x5   :  { %446 = vmatpush3.bf16.msra.mxu0 %v27_v8  ;;  %452 = vmatpush3.bf16.msra.mxu1 %v72_v9  ;;  %v391_v14 = vld [vmem:[%s608_s2] sm:$0xff]  ;;  %v421_v15 = vld [vmem:[%s606_s0 + $0x10] sm:$0xf]  ;;  %v423_v16 = vld [vmem:[%s606_s0 + $0x14] sm:$0xf] }
   0x6   :  { %457 = vmatprep.subr.bf16.mxu0 %v523_v1  ;;  %463 = vmatprep.subr.bf16.mxu1 %v523_v1  ;;  %v210_v17 = vand.u32 %v421_v15, %v25_v5  ;;  %v256_v18 = vand.u32 %v423_v16, %v25_v5  ;;  %v425_v19 = vld [vmem:[%s606_s0 + $0x18] sm:$0xf]  ;;  %v427_v20 = vld [vmem:[%s606_s0 + $0x1c] sm:$0xf]  ;;  %s527_s0 = smov [#allocation2]  }
   0x7   :  { %498 = vset.pattern.permute.xlu0 %v526_v13  ;;  %v302_v21 = vand.u32 %v425_v19, %v25_v5  ;;  %v348_v22 = vand.u32 %v427_v20, %v25_v5  ;;  %s406_s30 = sshll.u32 %s527_s0, 4  ;;  %s407_s30 = int_to_ptr.vmem [resolvable:$true] %s406_s30 }
   0x8   :  { %448 = vmatmul.mubr.msk.bf16.vlgmr.msra.gmra.mrb[0].mxu0 %vm18_vm3, %v16_v10  ;;  %454 = vmatmul.mubr.msk.bf16.vlgmr.msra.gmra.mrb[0].mxu1 %vm18_vm3, %v16_v10  ;;  %s499_s4 = scalar_lea.vmem %s407_s30, 128  ;;  %p504_p1 = scmp.lt.s32.totalorder %s407_s30, %s407_s30 }
   0x9   :  { %458 = vmatpush3.bf16.msra.mxu0 %v118_v11  ;;  %464 = vmatpush3.bf16.msra.mxu1 %v164_v12  ;;  %p500_p0 = scmp.ne.s32.totalorder %s407_s30, %s499_s4  ;;  %p505_p2 = scmp.lt.s32.totalorder %s499_s4, %s499_s4 }
   0xa   :  { %459 = vmatprep.mubr.msk.bf16.mxu0 %vm525_vm2, %v523_v1  ;;  %465 = vmatprep.mubr.msk.bf16.mxu1 %vm525_vm2, %v523_v1 }
   0xb   :  { %469 = vmatprep.subr.bf16.mxu0 %v523_v1  ;;  %475 = vmatprep.subr.bf16.mxu1 %v523_v1  ;;  %p506_p3 = por %p505_p2, %p504_p1 }
   0xc   :  { %394 = vperm.xlu0 %498, %v391_v14  }
   0xd   :  { %p507_p4 = pnand %p506_p3, %p500_p0 }
  0x10   :  { %460 = vmatmul.mubr.msk.bf16.vlgmr.msra.gmra.mrb[4].mxu0 %vm18_vm3, %v16_v10  ;;  %466 = vmatmul.mubr.msk.bf16.vlgmr.msra.gmra.mrb[4].mxu1 %vm18_vm3, %v16_v10 }
  0x11   :  { %470 = vmatpush3.bf16.msra.mxu0 %v210_v17  ;;  %476 = vmatpush3.bf16.msra.mxu1 %v256_v18 }
  0x12   :  { %471 = vmatprep.mubr.msk.bf16.mxu0 %vm525_vm2, %v523_v1  ;;  %477 = vmatprep.mubr.msk.bf16.mxu1 %vm525_vm2, %v523_v1 }
  0x13   :  { %481 = vmatprep.subr.bf16.mxu0 %v523_v1  ;;  %487 = vmatprep.subr.bf16.mxu1 %v523_v1 }
  0x18   :  { %472 = vmatmul.mubr.msk.bf16.vlgmr.msra.gmra.mrb[8].mxu0 %vm18_vm3, %v16_v10  ;;  %478 = vmatmul.mubr.msk.bf16.vlgmr.msra.gmra.mrb[8].mxu1 %vm18_vm3, %v16_v10 }
  0x19   :  { %482 = vmatpush3.bf16.msra.mxu0 %v302_v21  ;;  %488 = vmatpush3.bf16.msra.mxu1 %v348_v22 }
  0x1a   :  { %483 = vmatprep.mubr.msk.bf16.mxu0 %vm525_vm2, %v523_v1  ;;  %489 = vmatprep.mubr.msk.bf16.mxu1 %vm525_vm2, %v523_v1 }
  0x20   :  { %484 = vmatmul.mubr.msk.bf16.vlgmr.msra.gmra.mrb[12].mxu0 %vm18_vm3, %v16_v10  ;;  %490 = vmatmul.mubr.msk.bf16.vlgmr.msra.gmra.mrb[12].mxu1 %vm18_vm3, %v16_v10 }
  0x8b   :  { %v395_v52 = vpop.permute.xlu0 %394 }
  0xdb   :  { %v63_v23 = vpop.f32.mrb[0].mxu0  ;;  %v108_v24 = vpop.f32.mrb[0].mxu1 }
  0xdc   :  { %v114_v25 = vmax.f32 %v63_v23, %v108_v24  ;;  %v449_v26 = vpop.f32.mrb[1].mxu0  ;;  %v455_v27 = vpop.f32.mrb[1].mxu1 }
  0xdd   :  { %v66_v28 = vpop.f32.mrb[2].mxu0  ;;  %v111_v29 = vpop.f32.mrb[2].mxu1 }
  0xde   :  { %v450_v30 = vpop.f32.mrb[3].mxu0  ;;  %v456_v31 = vpop.f32.mrb[3].mxu1 }
  0xe3   :  { %v154_v32 = vpop.f32.mrb[4].mxu0  ;;  %v200_v33 = vpop.f32.mrb[4].mxu1 }
  0xe4   :  { %v160_v34 = vmax.f32 %v114_v25, %v154_v32  ;;  %v461_v35 = vpop.f32.mrb[5].mxu0  ;;  %v467_v36 = vpop.f32.mrb[5].mxu1 }
  0xe5   :  { %v157_v37 = vpop.f32.mrb[6].mxu0  ;;  %v203_v38 = vpop.f32.mrb[6].mxu1 }
  0xe6   :  { %v206_v39 = vmax.f32 %v160_v34, %v200_v33  ;;  %v462_v40 = vpop.f32.mrb[7].mxu0  ;;  %v468_v41 = vpop.f32.mrb[7].mxu1 }
  0xeb   :  { %v246_v42 = vpop.f32.mrb[8].mxu0  ;;  %v292_v43 = vpop.f32.mrb[8].mxu1 }
  0xec   :  { %v252_v44 = vmax.f32 %v206_v39, %v246_v42  ;;  %v473_v45 = vpop.f32.mrb[9].mxu0  ;;  %v479_v46 = vpop.f32.mrb[9].mxu1 }
  0xed   :  { %v249_v47 = vpop.f32.mrb[10].mxu0  ;;  %v295_v48 = vpop.f32.mrb[10].mxu1 }
  0xee   :  { %v298_v49 = vmax.f32 %v252_v44, %v292_v43  ;;  %v474_v50 = vpop.f32.mrb[11].mxu0  ;;  %v480_v51 = vpop.f32.mrb[11].mxu1 }
  0xf3   :  { %v338_v53 = vpop.f32.mrb[12].mxu0  ;;  %v384_v54 = vpop.f32.mrb[12].mxu1 }
  0xf4   :  { %v344_v55 = vmax.f32 %v298_v49, %v338_v53  ;;  %v485_v56 = vpop.f32.mrb[13].mxu0  ;;  %v491_v57 = vpop.f32.mrb[13].mxu1 }
  0xf5   :  { %v341_v58 = vpop.f32.mrb[14].mxu0  ;;  %v387_v59 = vpop.f32.mrb[14].mxu1 }
  0xf6   :  { %v390_v60 = vmax.f32 %v344_v55, %v384_v54  ;;  %v486_v61 = vpop.f32.mrb[15].mxu0  ;;  %v492_v62 = vpop.f32.mrb[15].mxu1 }
  0xf8   :  { %v397_v63 = vadd.f32 %v395_v52, %v390_v60 }
  0xfa   :  { %v398_v0 = vmax.f32 %v397_v63, 0.0 }
  0xfc   :  { %399 = vst [vmem:[#allocation2] sm:$0xff] %v398_v0 }
  0xfd   :  { %510 = shalt.err (!%p507_p4)
}
  0xfe   :  { %s511_s7 = scalar_lea.hbm %s609_s3, 128 }
  0xff   :  { %p512_p5 = scmp.ne.s32.totalorder %s609_s3, %s511_s7  ;;  %p515_p6 = scmp.lt.u32.totalorder %s511_s7, %s609_s3 }
 0x101   :  { %p517_p7 = pnand %p515_p6, %p512_p5 }
 0x103   :  { %520 = shalt.err (!%p517_p7)
}
 0x104   :  { %409 = dma.vmem_to_hbm [thread:$0]  %s407_s30, 128, %s609_s3, [#allocation3]  }
 0x105   :  { %521 = dma.done.wait [#allocation3], 128  }
 0x106   :  { %522 = vsyncadd [#allocation3], 4294967168 }
 0x107   :  { %413 = vsyncpa [#allocation3], 1 }

</bundles_post_ra>
